<compile_context>
chip_gen: v5e
topology: v5e:2x2
jax: 0.10.0
libtpu: 0.0.40
codegen_flags: <defaults>
</compile_context>

<pallas_src>
import jax
import jax.numpy as jnp
from jax.experimental import pallas as pl
from jax.experimental.pallas import tpu as pltpu


def _round_up(x: int, m: int) -> int:
    return (x + m - 1) // m * m


# ---------------------------------------------------------------------------
# Path 1: small-vocab path — one-hot @ table on the MXU, token-tiled.
# Exact because the one-hot weights are 0/1 (f32 accumulate).
# ---------------------------------------------------------------------------
def _embed_onehot_kernel(idx_ref, table_ref, out_ref):
    """idx_ref: (tok_tile, 1) i32 | table_ref: (V, D) f32 | out_ref: (tok_tile, D) f32."""
    # ids stay a (tok_tile, 1) VMEM block (not SMEM) because they must be
    # broadcast against the lane-iota below; the SMEM/scalar-prefetch layout is
    # used by the gather path instead.
    ids = idx_ref[...]                                     # (tok_tile, 1)
    tok_tile = ids.shape[0]
    vocab = table_ref.shape[0]
    # Built once per body invocation (no loop re-materialization of the iota).
    col = jax.lax.broadcasted_iota(jnp.int32, (tok_tile, vocab), 1)
    onehot = (ids == col).astype(table_ref.dtype)          # exact 0/1 weights
    # D (output last dim) equals the full array dim -> lane-dense stores.
    out_ref[...] = jnp.dot(
        onehot, table_ref[...], preferred_element_type=jnp.float32
    ).astype(out_ref.dtype)


def _embed_onehot(flat_ids: jax.Array, table: jax.Array, tok_tile: int) -> jax.Array:
    n_tok = flat_ids.shape[0]
    V, D = table.shape
    # tok_tile: multiple of 8, large (default 128) to fill the MXU M dimension,
    # but never larger than the (8-rounded) token count.
    tok_tile = max(8, _round_up(min(tok_tile, _round_up(n_tok, 8)), 8))
    n_pad = _round_up(n_tok, tok_tile)
    if n_pad != n_tok:
        flat_ids = jnp.pad(flat_ids, (0, n_pad - n_tok))   # pad with valid id 0
    ids2 = flat_ids.reshape(n_pad, 1)

    bpe = table.dtype.itemsize
    # VMEM budget: table may be double-buffered by the pipeline, plus the
    # double-buffered output / index tiles and the (tok_tile, V) one-hot.
    est = (2 * V * D * bpe              # resident table (assume 2 buffers)
           + 2 * tok_tile * D * bpe     # output tiles
           + 2 * tok_tile * 4           # index tiles
           + tok_tile * V * 4           # one-hot intermediate
           + (8 << 20))                 # headroom
    vmem_limit = min(max(est, 32 << 20), 48 << 20)   # stays inside v7x's 64 MiB

    out = pl.pallas_call(
        _embed_onehot_kernel,
        out_shape=jax.ShapeDtypeStruct((n_pad, D), table.dtype),
        grid_spec=pltpu.PrefetchScalarGridSpec(
            num_scalar_prefetch=0,
            grid=(n_pad // tok_tile,),
            in_specs=[
                pl.BlockSpec((tok_tile, 1), lambda i: (i, 0)),   # token ids tile
                pl.BlockSpec((V, D), lambda i: (0, 0)),          # whole table (constant block)
            ],
            out_specs=pl.BlockSpec((tok_tile, D), lambda i: (i, 0)),
        ),
        compiler_params=pltpu.CompilerParams(
            dimension_semantics=("parallel",),      # shard token tiles across TCs
            vmem_limit_bytes=int(vmem_limit)),
    )(ids2, table)
    return out[:n_tok]


# ---------------------------------------------------------------------------
# Path 2: production path — HBM table + scalar-prefetch-driven row gather.
# Token ids land in SMEM and feed the table BlockSpec's index_map, so each grid
# step DMAs exactly one needed (1, D) row.  No one-hot, no V-dependent VMEM.
# (A further refinement would gather several rows per step with manual
#  pltpu.make_async_copy double-buffering to amortize per-step overhead.)
# ---------------------------------------------------------------------------
def _embed_gather_kernel(ids_ref, row_ref, out_ref):
    del ids_ref  # consumed only by the index_maps (SMEM scalar prefetch)
    out_ref[...] = row_ref[...]


def _embed_gather(flat_ids: jax.Array, table: jax.Array) -> jax.Array:
    n_tok = flat_ids.shape[0]
    V, D = table.shape
    out = pl.pallas_call(
        _embed_gather_kernel,
        out_shape=jax.ShapeDtypeStruct((n_tok, D), table.dtype),
        grid_spec=pltpu.PrefetchScalarGridSpec(
            num_scalar_prefetch=1,                 # ids -> SMEM, drive index_maps
            grid=(n_tok,),
            in_specs=[
                # one (1, D) table row per step; row index read from SMEM ids
                pl.BlockSpec((1, D), lambda i, ids: (ids[i], 0)),
            ],
            out_specs=pl.BlockSpec((1, D), lambda i, ids: (i, 0)),
        ),
        compiler_params=pltpu.CompilerParams(
            dimension_semantics=("arbitrary",)),
    )(flat_ids, table)
    return out


# ---------------------------------------------------------------------------
# Wrapper == WordVectorEmbeddingLayer.forward (frozen embedding lookup)
# ---------------------------------------------------------------------------
def word_vector_embedding(indices: jax.Array, table: jax.Array,
                          *, tok_tile: int = 128, path: str = None) -> jax.Array:
    """indices: int [B, T]; table: float [V, D]  ->  float [B, T, D].

    path: None (auto), "onehot" (VMEM-resident table, MXU one-hot matmul),
          or "gather" (HBM table + scalar-prefetch DMA row gather).
    """
    B, T = indices.shape
    V, D = table.shape
    flat = indices.reshape(B * T).astype(jnp.int32)
    # Clamp (like jnp.take 'clip') so an out-of-range id can never address an
    # out-of-bounds table row; nn.Embedding would error instead.
    flat = jnp.clip(flat, 0, V - 1)

    if path is None:
        bpe = table.dtype.itemsize
        resident = 2 * V * D * bpe + 128 * V * 4 + (8 << 20)
        path = "onehot" if (V <= 4096 and resident <= (48 << 20)) else "gather"

    if path == "onehot":
        out = _embed_onehot(flat, table, tok_tile)
    elif path == "gather":
        out = _embed_gather(flat, table)
    else:
        raise ValueError(f"unknown path: {path}")
    return out.reshape(B, T, D)


if __name__ == "__main__":
    # Synthetic "WordEmbedModel": deterministic frozen embedding matrix.
    key = jax.random.PRNGKey(0)
    k_tab, k_idx = jax.random.split(key)

    vocab_size = 256          # num_embeddings
    embedding_dim = 128       # embed_model.matrix.shape[1]
    batch = 2
    token_length = 8          # feature_vectorizer.token_length

    table = jax.random.normal(k_tab, (vocab_size, embedding_dim), dtype=jnp.float32)
    x = jax.random.randint(k_idx, (batch, token_length), 0, vocab_size, dtype=jnp.int32)

    # Reference: plain gather, same semantics as nn.Embedding.forward.
    ref = jnp.take(table, x, axis=0)

    # Auto path (small vocab -> VMEM-resident table, MXU one-hot matmul).
    out_onehot = jax.block_until_ready(word_vector_embedding(x, table))
    assert out_onehot.shape == (batch, token_length, embedding_dim)
    assert out_onehot.dtype == table.dtype
    assert jnp.allclose(out_onehot, ref, atol=0.0, rtol=0.0), "onehot path mismatch"

    # Production path, forced here at small shapes: HBM table + SMEM-id gather.
    out_gather = jax.block_until_ready(word_vector_embedding(x, table, path="gather"))
    assert out_gather.shape == (batch, token_length, embedding_dim)
    assert out_gather.dtype == table.dtype
    assert jnp.allclose(out_gather, ref, atol=0.0, rtol=0.0), "gather path mismatch"

    # TODO(synk): trainable-embedding update / state_dict persistence logic is
    # host-side bookkeeping with no kernel equivalent; only forward is ported.
    print("KERNEL_OK")
</pallas_src>

<mosaic_0001>
module attributes {stable_mosaic.version = 11 : i64} {
  func.func @_embed_onehot_kernel(%arg0: i32, %arg1: memref<16x1xi32, #tpu.memory_space<vmem>>, %arg2: memref<256x128xf32, #tpu.memory_space<vmem>>, %arg3: memref<16x128xf32, #tpu.memory_space<vmem>>) attributes {dimension_semantics = [#tpu.dimension_semantics<parallel>], iteration_bounds = array<i64: 1>, scalar_prefetch = 0 : i64, scratch_operands = 0 : i64, tpu.core_type = #tpu.core_type<tc>, window_params = [{transform_indices = @transform_0, window_bounds = array<i64: 16, 1>}, {pipeline_mode = #tpu.pipeline_mode<synchronous>, transform_indices = @transform_1, window_bounds = array<i64: 256, 128>}, {transform_indices = @transform_2, window_bounds = array<i64: 16, 128>}]} {
    %c0 = arith.constant 0 : index
    %c0_0 = arith.constant 0 : index
    %0 = vector.load %arg1[%c0, %c0_0] : memref<16x1xi32, #tpu.memory_space<vmem>>, vector<16x1xi32>
    %1 = tpu.iota {dimensions = array<i32: 1>} : vector<16x256xi32>
    %2 = vector.broadcast %0 : vector<16x1xi32> to vector<16x256xi32>
    %3 = arith.cmpi eq, %2, %1 : vector<16x256xi32>
    %4 = arith.extui %3 : vector<16x256xi1> to vector<16x256xi32>
    %5 = arith.sitofp %4 : vector<16x256xi32> to vector<16x256xf32>
    %c0_1 = arith.constant 0 : index
    %c0_2 = arith.constant 0 : index
    %6 = vector.load %arg2[%c0_1, %c0_2] : memref<256x128xf32, #tpu.memory_space<vmem>>, vector<256x128xf32>
    %cst = arith.constant dense<0.000000e+00> : vector<16x128xf32>
    %7 = tpu.matmul %5, %6, %cst {dimension_numbers = #tpu.dot_dimension_numbers<[1], [0], [0], [1], [0, 0, 1, 1], [], []>} : vector<16x256xf32>, vector<256x128xf32>, vector<16x128xf32> -> vector<16x128xf32>
    %c0_3 = arith.constant 0 : index
    %c0_4 = arith.constant 0 : index
    %8 = vector.load %arg3[%c0_3, %c0_4] : memref<16x128xf32, #tpu.memory_space<vmem>>, vector<16x128xf32>
    tpu.vector_store %arg3[%c0_3, %c0_4], %7 {strides = array<i32>} : memref<16x128xf32, #tpu.memory_space<vmem>>, vector<16x128xf32>,
    return
  }
  func.func @transform_0(%arg0: i32) -> (i32, i32) {
    %c0_i32 = arith.constant 0 : i32
    %c0_i32_0 = arith.constant 0 : i32
    return %arg0, %c0_i32 : i32, i32
  }
  func.func @transform_1(%arg0: i32) -> (i32, i32) {
    %c0_i32 = arith.constant 0 : i32
    %c0_i32_0 = arith.constant 0 : i32
    %c0_i32_1 = arith.constant 0 : i32
    return %c0_i32, %c0_i32_0 : i32, i32
  }
  func.func @transform_2(%arg0: i32) -> (i32, i32) {
    %c0_i32 = arith.constant 0 : i32
    %c0_i32_0 = arith.constant 0 : i32
    return %arg0, %c0_i32 : i32, i32
  }
}

</mosaic_0001>

<bundles_post_ra>
// kernel: tpu_custom_call.1
= control target key start
LH: loop header
LB: loop body
LE: loop exit
PB: predicated region body
PF: predicated region fallthrough
CT: control target
= control target key end

     0   :  { %7 = vsyncpa [#allocation3], 0  ;;  %s288_s0 = inlined_call_operand.vmem [shape: s32[16,1], index: 0, kind: input, shape index: {}]   ;;  %s289_s1 = inlined_call_operand.hbm [shape: f32[256,128], index: 1, kind: input, shape index: {}]   ;;  %s290_s2 = inlined_call_operand.hbm [shape: f32[16,128], index: 2, kind: output, shape index: {}]  }
   0x1   :  { %8 = vsyncpa [#allocation4], 0  ;;  %s15_s11 = sshll.u32 %s289_s1, 4  ;;  %s249_s12 = smov [#allocation2]   ;;  %s16_s11 = int_to_ptr.hbm [resolvable:$true] %s15_s11 }
   0x2   :  { %s17_s13 = sshll.u32 %s249_s12, 4  ;;  %s250_s14 = smov 128   ;;  %s18_s13 = int_to_ptr.vmem [resolvable:$true] %s17_s13 }
   0x3   :  { %s251_s15 = smov 8  }
   0x4   :  { %23 = dma.hbm_to_vmem [thread:$0]  %s16_s11, 4096, %s18_s13, [#allocation3], %s250_s14, %s250_s14, %s251_s15  }
   0x5   :  { %245 = dma.done.wait [#allocation3], 4096  }
   0x6   :  { %246 = vsyncadd [#allocation3], 4294963200  ;;  %v252_v0 = vmov 0   ;;  %v29_v1 = vld [vmem:[%s288_s0 + $0x8] sm:$0xff]  ;;  %v66_v2 = vld [vmem:[#allocation2 + $0x78] sm:$0xff]  ;;  %v30_v35 = vlaneseq  ;;  %v253_v39 = vmov 1.0  }
   0x7   :  { %196 = vset.pattern.permute.xlu0 %v252_v0  ;;  %158 = vmatpush.msra.mxu2 %v66_v2  ;;  %v82_v3 = vld [vmem:[#allocation2 + $0xf8] sm:$0xff]  ;;  %v65_v4 = vld [vmem:[#allocation2 + $0x70] sm:$0xff]  ;;  %v64_v6 = vld [vmem:[#allocation2 + $0x68] sm:$0xff]  ;;  %s137_s22 = sshll.u32 %s290_s2, 4  ;;  %s138_s22 = int_to_ptr.hbm [resolvable:$true] %s137_s22 }
   0x8   :  { %37 = vperm.xlu0 %196, %v29_v1   ;;  %v81_v5 = vld [vmem:[#allocation2 + $0xf0] sm:$0xff]  ;;  %174 = vmatpush.msra.mxu3 %v82_v3  ;;  %v80_v7 = vld [vmem:[#allocation2 + $0xe8] sm:$0xff]  ;;  %v63_v8 = vld [vmem:[#allocation2 + $0x60] sm:$0xff]  ;;  %v31_v36 = vand.u32 127, %v30_v35 }
   0x9   :  { %83 = vmatpush.msra.mxu0 %v66_v2  ;;  %159 = vmatpush.msra.mxu2 %v65_v4  ;;  %v79_v9 = vld [vmem:[#allocation2 + $0xe0] sm:$0xff]  ;;  %v62_v11 = vld [vmem:[#allocation2 + $0x58] sm:$0xff]  ;;  %v61_v13 = vld [vmem:[#allocation2 + $0x50] sm:$0xff] }
   0xa   :  { %106 = vmatpush.msra.mxu1 %v82_v3  ;;  %175 = vmatpush.msra.mxu3 %v81_v5  ;;  %v28_v10 = vld [vmem:[%s288_s0] sm:$0xff]  ;;  %v78_v12 = vld [vmem:[#allocation2 + $0xd8] sm:$0xff]  ;;  %v77_v14 = vld [vmem:[#allocation2 + $0xd0] sm:$0xff]  ;;  %v32_v37 = vadd.s32 128, %v31_v36  ;;  %s254_s0 = smov [#allocation5]  }
   0xb   :  { %84 = vmatpush.msra.mxu0 %v65_v4  ;;  %160 = vmatpush.msra.mxu2 %v64_v6  ;;  %v60_v15 = vld [vmem:[#allocation2 + $0x48] sm:$0xff]  ;;  %v59_v17 = vld [vmem:[#allocation2 + $0x40] sm:$0xff]  ;;  %v58_v19 = vld [vmem:[#allocation2 + $0x38] sm:$0xff]  ;;  %s135_s19 = sshll.u32 %s254_s0, 4  ;;  %s136_s19 = int_to_ptr.vmem [resolvable:$true] %s135_s19 }
   0xc   :  { %107 = vmatpush.msra.mxu1 %v81_v5  ;;  %176 = vmatpush.msra.mxu3 %v80_v7  ;;  %v76_v16 = vld [vmem:[#allocation2 + $0xc8] sm:$0xff]  ;;  %v75_v18 = vld [vmem:[#allocation2 + $0xc0] sm:$0xff]  ;;  %v74_v20 = vld [vmem:[#allocation2 + $0xb8] sm:$0xff] }
   0xd   :  { %85 = vmatpush.msra.mxu0 %v64_v6  ;;  %161 = vmatpush.msra.mxu2 %v63_v8  ;;  %v57_v21 = vld [vmem:[#allocation2 + $0x30] sm:$0xff]  ;;  %v56_v23 = vld [vmem:[#allocation2 + $0x28] sm:$0xff]  ;;  %v55_v25 = vld [vmem:[#allocation2 + $0x20] sm:$0xff] }
   0xe   :  { %108 = vmatpush.msra.mxu1 %v80_v7  ;;  %177 = vmatpush.msra.mxu3 %v79_v9  ;;  %v73_v22 = vld [vmem:[#allocation2 + $0xb0] sm:$0xff]  ;;  %v72_v24 = vld [vmem:[#allocation2 + $0xa8] sm:$0xff]  ;;  %v71_v26 = vld [vmem:[#allocation2 + $0xa0] sm:$0xff] }
   0xf   :  { %86 = vmatpush.msra.mxu0 %v63_v8  ;;  %162 = vmatpush.msra.mxu2 %v62_v11  ;;  %v54_v27 = vld [vmem:[#allocation2 + $0x18] sm:$0xff]  ;;  %v53_v29 = vld [vmem:[#allocation2 + $0x10] sm:$0xff]  ;;  %v52_v31 = vld [vmem:[#allocation2 + $0x8] sm:$0xff] }
  0x10   :  { %34 = vperm.xlu0 %196, %v28_v10   ;;  %178 = vmatpush.msra.mxu3 %v78_v12  ;;  %v70_v28 = vld [vmem:[#allocation2 + $0x98] sm:$0xff]  ;;  %v69_v30 = vld [vmem:[#allocation2 + $0x90] sm:$0xff]  ;;  %v68_v32 = vld [vmem:[#allocation2 + $0x88] sm:$0xff] }
  0x11   :  { %109 = vmatpush.msra.mxu1 %v79_v9  ;;  %163 = vmatpush.msra.mxu2 %v61_v13  ;;  %v51_v33 = vld [vmem:[#allocation2] sm:$0xff] }
  0x12   :  { %87 = vmatpush.msra.mxu0 %v62_v11  ;;  %179 = vmatpush.msra.mxu3 %v77_v14  ;;  %v67_v34 = vld [vmem:[#allocation2 + $0x80] sm:$0xff] }
  0x13   :  { %110 = vmatpush.msra.mxu1 %v78_v12  ;;  %164 = vmatpush.msra.mxu2 %v60_v15 }
  0x14   :  { %88 = vmatpush.msra.mxu0 %v61_v13  ;;  %180 = vmatpush.msra.mxu3 %v76_v16 }
  0x15   :  { %111 = vmatpush.msra.mxu1 %v77_v14  ;;  %165 = vmatpush.msra.mxu2 %v59_v17 }
  0x16   :  { %89 = vmatpush.msra.mxu0 %v60_v15  ;;  %181 = vmatpush.msra.mxu3 %v75_v18 }
  0x17   :  { %112 = vmatpush.msra.mxu1 %v76_v16  ;;  %166 = vmatpush.msra.mxu2 %v58_v19 }
  0x18   :  { %90 = vmatpush.msra.mxu0 %v59_v17  ;;  %182 = vmatpush.msra.mxu3 %v74_v20 }
  0x19   :  { %113 = vmatpush.msra.mxu1 %v75_v18  ;;  %167 = vmatpush.msra.mxu2 %v57_v21 }
  0x1a   :  { %91 = vmatpush.msra.mxu0 %v58_v19  ;;  %183 = vmatpush.msra.mxu3 %v73_v22 }
  0x1b   :  { %114 = vmatpush.msra.mxu1 %v74_v20  ;;  %168 = vmatpush.msra.mxu2 %v56_v23 }
  0x1c   :  { %92 = vmatpush.msra.mxu0 %v57_v21  ;;  %184 = vmatpush.msra.mxu3 %v72_v24 }
  0x1d   :  { %115 = vmatpush.msra.mxu1 %v73_v22  ;;  %169 = vmatpush.msra.mxu2 %v55_v25 }
  0x1e   :  { %93 = vmatpush.msra.mxu0 %v56_v23  ;;  %185 = vmatpush.msra.mxu3 %v71_v26 }
  0x1f   :  { %116 = vmatpush.msra.mxu1 %v72_v24  ;;  %170 = vmatpush.msra.mxu2 %v54_v27 }
  0x20   :  { %94 = vmatpush.msra.mxu0 %v55_v25  ;;  %186 = vmatpush.msra.mxu3 %v70_v28 }
  0x21   :  { %117 = vmatpush.msra.mxu1 %v71_v26  ;;  %171 = vmatpush.msra.mxu2 %v53_v29 }
  0x22   :  { %95 = vmatpush.msra.mxu0 %v54_v27  ;;  %187 = vmatpush.msra.mxu3 %v69_v30 }
  0x23   :  { %118 = vmatpush.msra.mxu1 %v70_v28  ;;  %172 = vmatpush.msra.mxu2 %v52_v31 }
  0x24   :  { %96 = vmatpush.msra.mxu0 %v53_v29  ;;  %188 = vmatpush.msra.mxu3 %v68_v32 }
  0x25   :  { %119 = vmatpush.msra.mxu1 %v69_v30  ;;  %173 = vmatpush.msra.mxu2 %v51_v33 }
  0x26   :  { %97 = vmatpush.msra.mxu0 %v52_v31  ;;  %189 = vmatpush.msra.mxu3 %v67_v34 }
  0x27   :  { %120 = vmatpush.msra.mxu1 %v68_v32 }
  0x28   :  { %98 = vmatpush.msra.mxu0 %v51_v33 }
  0x29   :  { %121 = vmatpush.msra.mxu1 %v67_v34 }
  0x7a   :  { %v38_v38 = vpop.permute.xlu0 %37 }
  0x7b   :  { %vm41_vm0 = vcmp.eq.s32.totalorder %v38_v38, %v31_v36  ;;  %vm42_vm1 = vcmp.eq.s32.totalorder %v38_v38, %v32_v37 }
  0x7c   :  { %155 = vmatmul.msk.f32.vlgmr.msra.gmra.mxu2 %vm41_vm0, %v253_v39  ;;  %157 = vmatmul.msk.f32.vlgmr.msra.gmra.mxu3 %vm42_vm1, %v253_v39 }
  0x82   :  { %v35_v40 = vpop.permute.xlu0 %34 }
  0x83   :  { %vm39_vm2 = vcmp.eq.s32.totalorder %v35_v40, %v31_v36  ;;  %vm40_vm3 = vcmp.eq.s32.totalorder %v35_v40, %v32_v37 }
  0x84   :  { %154 = vmatmul.msk.f32.vlgmr.msra.gmra.mxu0 %vm39_vm2, %v253_v39  ;;  %156 = vmatmul.msk.f32.vlgmr.msra.gmra.mxu1 %vm40_vm3, %v253_v39 }
  0xff   :  { %v103_v41 = vpop.f32.mrf.mxu2  ;;  %v126_v42 = vpop.f32.mrf.mxu3 }
 0x100   :  { %v127_v43 = vadd.f32 %v126_v42, %v103_v41 }
 0x101   :  { %v100_v44 = vpop.f32.mrf.mxu0  ;;  %v123_v45 = vpop.f32.mrf.mxu1 }
 0x102   :  { %130 = vst [vmem:[#allocation5 + $0x8] sm:$0xff] %v127_v43  ;;  %v124_v46 = vadd.f32 %v123_v45, %v100_v44 }
 0x104   :  { %129 = vst [vmem:[#allocation5] sm:$0xff] %v124_v46 }
 0x105   :  { %143 = dma.vmem_to_hbm [thread:$0]  %s136_s19, 256, %s138_s22, [#allocation4], %s250_s14, %s250_s14, %s251_s15  }
 0x106   :  { %247 = dma.done.wait [#allocation4], 256  }
 0x107   :  { %248 = vsyncadd [#allocation4], 4294967040 }
 0x108   :  { %148 = vsyncpa [#allocation3], 1 }
 0x109   :  { %149 = vsyncpa [#allocation4], 1 }

</bundles_post_ra>
